<compile_context>
chip_gen: v5e
topology: v5e:2x2
jax: 0.10.0
libtpu: 0.0.40
codegen_flags: <defaults>
</compile_context>

<pallas_src>
import functools

import jax
import jax.numpy as jnp
from jax.experimental import pallas as pl
from jax.experimental.pallas import tpu as pltpu


def _ohem_pixel_stats_kernel(pred_ref, lab_ref, ce_ref, tprob_ref, *, ignore_index):
    logits = pred_ref[0].astype(jnp.float32)     # (C, TILE_P): classes on sublanes, pixels on lanes
    labels = lab_ref[0]                          # (1, TILE_P) int32 (padded tail = ignore_index)

    # Numerically stable softmax pieces; the only (C, TILE_P)-sized transcendental is exp.
    m = jnp.max(logits, axis=0, keepdims=True)                 # (1, TILE_P)
    ez = jnp.exp(logits - m)                                   # (C, TILE_P)
    s = jnp.sum(ez, axis=0, keepdims=True)                     # (1, TILE_P)

    cls = jax.lax.broadcasted_iota(jnp.int32, logits.shape, 0)
    picked_logit = jnp.sum(jnp.where(cls == labels, logits, 0.0), axis=0, keepdims=True)

    valid = labels != ignore_index
    ce = (m + jnp.log(s)) - picked_logit                       # -log_softmax(pred)[target]
    tprob = jnp.exp(-ce)                                       # == softmax(pred)[target], cheaper than ez/s

    ce_ref[0] = jnp.where(valid, ce, 0.0)                      # 0 at ignored / padded / OOB pixels
    tprob_ref[0] = jnp.where(valid, tprob, 1.0)                # PyTorch: masked_fill_(~valid, 1)


def _pick_tile_and_vmem(num_classes, hw, batch, tile_pixels=None):
    """Generation-aware pixel-tile and VMEM-limit selection."""
    try:
        vmem_bytes = int(pltpu.get_tpu_info().vmem_capacity_bytes)
    except Exception:
        vmem_bytes = 64 << 20                                   # conservative (v7x-sized) fallback
    small_vmem = vmem_bytes <= (64 << 20)                       # v7x: 64 MiB/TC; v5e/v6e: 128 MiB
    base = tile_pixels if tile_pixels is not None else (16384 if small_vmem else 32768)
    budget = (20 << 20) if small_vmem else (64 << 20)
    # ~7 live (C, tile) f32 slabs: double-buffered pred input + ~5 in-kernel intermediates.
    per_pixel = 4 * num_classes * 7
    tile = max(128, min(base, (budget // per_pixel) // 128 * 128))
    tile = min(tile, pl.cdiv(hw, 128) * 128)
    # Guarantee >= 2 grid steps so ("parallel","parallel") can use both v7x TensorCores.
    if batch * pl.cdiv(hw, tile) < 2 and hw > 128:
        tile = pl.cdiv(pl.cdiv(hw, 2), 128) * 128
    vmem_limit = min(100 << 20, vmem_bytes * 3 // 4)
    return int(tile), int(vmem_limit)


def prob_ohem_cross_entropy_2d(pred, target, *, ignore_index, thresh=0.7,
                               min_kept=256, tile_pixels=None):
    """pred: (N, C, H, W) float logits; target: (N, H, W) int labels. Returns scalar loss."""
    N, C, H, W = pred.shape
    HW = H * W
    P = N * HW

    tile, vmem_limit = _pick_tile_and_vmem(C, HW, N, tile_pixels)
    num_tiles = pl.cdiv(HW, tile)
    hw_pad = num_tiles * tile

    pred3 = pred.reshape(N, C, HW)                 # free reshape; NOT padded (no extra HBM pass)
    lab3 = target.reshape(N, 1, HW).astype(jnp.int32)
    if hw_pad != HW:
        # Only the tiny int32 label array is padded; ignore_index marks the tail lanes invalid,
        # which also masks whatever garbage the partial last pred block reads out of bounds.
        lab3 = jnp.pad(lab3, ((0, 0), (0, 0), (0, hw_pad - HW)),
                       constant_values=ignore_index)

    kernel = functools.partial(_ohem_pixel_stats_kernel, ignore_index=ignore_index)
    ce3, tprob3 = pl.pallas_call(
        kernel,
        out_shape=(
            jax.ShapeDtypeStruct((N, 1, hw_pad), jnp.float32),   # per-pixel CE (0 where invalid)
            jax.ShapeDtypeStruct((N, 1, hw_pad), jnp.float32),   # target-class prob (1 where invalid)
        ),
        grid_spec=pltpu.PrefetchScalarGridSpec(
            num_scalar_prefetch=0,
            grid=(N, num_tiles),
            in_specs=[
                pl.BlockSpec((1, C, tile), lambda n, t: (n, 0, t)),   # partial last block allowed
                pl.BlockSpec((1, 1, tile), lambda n, t: (n, 0, t)),
            ],
            out_specs=[
                pl.BlockSpec((1, 1, tile), lambda n, t: (n, 0, t)),
                pl.BlockSpec((1, 1, tile), lambda n, t: (n, 0, t)),
            ],
        ),
        compiler_params=pltpu.CompilerParams(
            dimension_semantics=("parallel", "parallel"),
            vmem_limit_bytes=vmem_limit),
    )(pred3, lab3)

    # Padded kernel outputs are consumed directly (no slice/reshape copy): padded pixels carry
    # ce=0, tprob=1.0, valid=False, so the threshold search and masked mean are unchanged.
    ce = ce3.reshape(-1)
    tprob = tprob3.reshape(-1)
    valid = lab3.reshape(-1) != ignore_index
    num_valid = jnp.sum(valid)

    # TODO(synk): the OHEM threshold needs a global k-th smallest (top_k) plus a masked mean;
    # these O(P) steps stay in plain JAX on the (P,)-sized vectors produced by the kernel.
    if min_kept > 0:
        k = min(P, int(min_kept))
        neg_topk, _ = jax.lax.top_k(-tprob, k)            # k-th smallest tprob == -neg_topk[k-1]
        thr_v = -neg_topk[k - 1]
        threshold = jnp.where(thr_v > thresh, thr_v, jnp.float32(thresh))
        kept = tprob <= threshold
        do_ohem = (num_valid >= min_kept) & (num_valid > 0)
        final_valid = jnp.where(do_ohem, valid & kept, valid)
    else:
        final_valid = valid

    count = jnp.sum(final_valid).astype(jnp.float32)
    return jnp.sum(jnp.where(final_valid, ce, 0.0)) / count


def _ohem_ref(pred, target, ignore_index, thresh, min_kept):
    """Pure-JAX reference mirroring the PyTorch module's forward."""
    b, c, h, w = pred.shape
    P = b * h * w
    tgt = target.reshape(-1)
    valid = tgt != ignore_index
    tgt0 = jnp.where(valid, tgt, 0)
    num_valid = jnp.sum(valid)

    prob = jax.nn.softmax(pred, axis=1)
    prob = jnp.transpose(prob, (1, 0, 2, 3)).reshape(c, -1)
    prob = jnp.where(valid[None, :], prob, 1.0)
    mask_prob = prob[tgt0, jnp.arange(P)]

    if min_kept > 0:
        k = min(P, min_kept) - 1
        thr_v = jnp.sort(mask_prob)[k]
        threshold = jnp.where(thr_v > thresh, thr_v, jnp.float32(thresh))
        kept = mask_prob <= threshold
        do_ohem = (num_valid >= min_kept) & (num_valid > 0)
        final_valid = jnp.where(do_ohem, valid & kept, valid)
    else:
        final_valid = valid

    log_sm = jax.nn.log_softmax(pred, axis=1)
    log_sm = jnp.transpose(log_sm, (1, 0, 2, 3)).reshape(c, -1)
    ce = -log_sm[tgt0, jnp.arange(P)]
    return jnp.sum(jnp.where(final_valid, ce, 0.0)) / jnp.sum(final_valid).astype(jnp.float32)


if __name__ == "__main__":
    key = jax.random.PRNGKey(0)
    ignore_index = 255

    # Test 1: module-default config, tile divides HW exactly.
    k1, k2, k3, k4, k5, k6 = jax.random.split(key, 6)
    N, C, H, W = 2, 19, 16, 16
    thresh, min_kept = 0.7, 256
    pred = 4.0 * jax.random.normal(k1, (N, C, H, W), dtype=jnp.float32)
    labels = jax.random.randint(k2, (N, H, W), 0, C, dtype=jnp.int32)
    labels = jnp.where(jax.random.uniform(k3, (N, H, W)) < 0.1, ignore_index, labels)

    loss = jax.block_until_ready(
        prob_ohem_cross_entropy_2d(pred, labels, ignore_index=ignore_index,
                                   thresh=thresh, min_kept=min_kept))
    ref = _ohem_ref(pred, labels, ignore_index, thresh, min_kept)
    assert loss.shape == ()
    assert jnp.allclose(loss, ref, atol=1e-5, rtol=1e-5), (loss, ref)

    # Test 2: ragged pixel tiling (HW=400, tile=256 -> partial last block, unpadded pred).
    N2, C2, H2, W2 = 1, 7, 20, 20
    thresh2, min_kept2 = 0.7, 64
    pred2 = 4.0 * jax.random.normal(k4, (N2, C2, H2, W2), dtype=jnp.float32)
    labels2 = jax.random.randint(k5, (N2, H2, W2), 0, C2, dtype=jnp.int32)
    labels2 = jnp.where(jax.random.uniform(k6, (N2, H2, W2)) < 0.1, ignore_index, labels2)

    loss2 = jax.block_until_ready(
        prob_ohem_cross_entropy_2d(pred2, labels2, ignore_index=ignore_index,
                                   thresh=thresh2, min_kept=min_kept2, tile_pixels=256))
    ref2 = _ohem_ref(pred2, labels2, ignore_index, thresh2, min_kept2)
    assert loss2.shape == ()
    assert jnp.allclose(loss2, ref2, atol=1e-5, rtol=1e-5), (loss2, ref2)

    print("KERNEL_OK")
</pallas_src>

<mosaic_0001>
module attributes {stable_mosaic.version = 11 : i64} {
  func.func @_ohem_pixel_stats_kernel(%arg0: i32, %arg1: i32, %arg2: memref<1x19x256xf32, #tpu.memory_space<vmem>>, %arg3: memref<1x1x256xi32, #tpu.memory_space<vmem>>, %arg4: memref<1x1x256xf32, #tpu.memory_space<vmem>>, %arg5: memref<1x1x256xf32, #tpu.memory_space<vmem>>) attributes {dimension_semantics = [#tpu.dimension_semantics<parallel>, #tpu.dimension_semantics<parallel>], iteration_bounds = array<i64: 2, 1>, scalar_prefetch = 0 : i64, scratch_operands = 0 : i64, tpu.core_type = #tpu.core_type<tc>, window_params = [{transform_indices = @transform_0, window_bounds = array<i64: 1, 19, 256>}, {transform_indices = @transform_1, window_bounds = array<i64: 1, 1, 256>}, {transform_indices = @transform_2, window_bounds = array<i64: 1, 1, 256>}, {transform_indices = @transform_3, window_bounds = array<i64: 1, 1, 256>}]} {
    %c0 = arith.constant 0 : index
    %c0_0 = arith.constant 0 : index
    %c0_1 = arith.constant 0 : index
    %0 = vector.load %arg2[%c0, %c0_0, %c0_1] : memref<1x19x256xf32, #tpu.memory_space<vmem>>, vector<1x19x256xf32>
    %1 = vector.shape_cast %0 : vector<1x19x256xf32> to vector<19x256xf32>
    %c0_2 = arith.constant 0 : index
    %c0_3 = arith.constant 0 : index
    %c0_4 = arith.constant 0 : index
    %2 = vector.load %arg3[%c0_2, %c0_3, %c0_4] : memref<1x1x256xi32, #tpu.memory_space<vmem>>, vector<1x1x256xi32>
    %3 = vector.shape_cast %2 : vector<1x1x256xi32> to vector<1x256xi32>
    %cst = arith.constant dense<0xFF800000> : vector<256xf32>
    %4 = vector.multi_reduction <maximumf>, %1, %cst [0] : vector<19x256xf32> to vector<256xf32>
    %5 = vector.shape_cast %4 : vector<256xf32> to vector<1x256xf32>
    %6 = vector.broadcast %5 : vector<1x256xf32> to vector<19x256xf32>
    %7 = arith.subf %1, %6 : vector<19x256xf32>
    %8 = math.exp %7 : vector<19x256xf32>
    %cst_5 = arith.constant dense<0.000000e+00> : vector<256xf32>
    %9 = vector.multi_reduction <add>, %8, %cst_5 [0] : vector<19x256xf32> to vector<256xf32>
    %10 = vector.shape_cast %9 : vector<256xf32> to vector<1x256xf32>
    %11 = tpu.iota {dimensions = array<i32: 0>} : vector<19x256xi32>
    %12 = vector.broadcast %3 : vector<1x256xi32> to vector<19x256xi32>
    %13 = arith.cmpi eq, %11, %12 : vector<19x256xi32>
    %cst_6 = arith.constant 0.000000e+00 : f32
    %14 = vector.broadcast %cst_6 : f32 to vector<19x256xf32>
    %15 = arith.select %13, %1, %14 : vector<19x256xi1>, vector<19x256xf32>
    %cst_7 = arith.constant dense<0.000000e+00> : vector<256xf32>
    %16 = vector.multi_reduction <add>, %15, %cst_7 [0] : vector<19x256xf32> to vector<256xf32>
    %17 = vector.shape_cast %16 : vector<256xf32> to vector<1x256xf32>
    %c255_i32 = arith.constant 255 : i32
    %18 = vector.broadcast %c255_i32 : i32 to vector<1x256xi32>
    %19 = arith.cmpi ne, %3, %18 : vector<1x256xi32>
    %20 = math.log %10 : vector<1x256xf32>
    %21 = arith.addf %5, %20 : vector<1x256xf32>
    %22 = arith.subf %21, %17 : vector<1x256xf32>
    %cst_8 = arith.constant 0.000000e+00 : f32
    %23 = vector.broadcast %cst_8 : f32 to vector<1x256xf32>
    %24 = arith.subf %23, %22 : vector<1x256xf32>
    %25 = math.exp %24 : vector<1x256xf32>
    %cst_9 = arith.constant 0.000000e+00 : f32
    %26 = vector.broadcast %cst_9 : f32 to vector<1x256xf32>
    %27 = arith.select %19, %22, %26 : vector<1x256xi1>, vector<1x256xf32>
    %c0_10 = arith.constant 0 : index
    %c0_11 = arith.constant 0 : index
    %c0_12 = arith.constant 0 : index
    %28 = vector.load %arg4[%c0_10, %c0_11, %c0_12] : memref<1x1x256xf32, #tpu.memory_space<vmem>>, vector<1x1x256xf32>
    %29 = vector.shape_cast %28 : vector<1x1x256xf32> to vector<1x256xf32>
    %30 = vector.shape_cast %27 : vector<1x256xf32> to vector<1x1x256xf32>
    tpu.vector_store %arg4[%c0_10, %c0_11, %c0_12], %30 {strides = array<i32>} : memref<1x1x256xf32, #tpu.memory_space<vmem>>, vector<1x1x256xf32>,
    %cst_13 = arith.constant 1.000000e+00 : f32
    %31 = vector.broadcast %cst_13 : f32 to vector<1x256xf32>
    %32 = arith.select %19, %25, %31 : vector<1x256xi1>, vector<1x256xf32>
    %c0_14 = arith.constant 0 : index
    %c0_15 = arith.constant 0 : index
    %c0_16 = arith.constant 0 : index
    %33 = vector.load %arg5[%c0_14, %c0_15, %c0_16] : memref<1x1x256xf32, #tpu.memory_space<vmem>>, vector<1x1x256xf32>
    %34 = vector.shape_cast %33 : vector<1x1x256xf32> to vector<1x256xf32>
    %35 = vector.shape_cast %32 : vector<1x256xf32> to vector<1x1x256xf32>
    tpu.vector_store %arg5[%c0_14, %c0_15, %c0_16], %35 {strides = array<i32>} : memref<1x1x256xf32, #tpu.memory_space<vmem>>, vector<1x1x256xf32>,
    return
  }
  func.func @transform_0(%arg0: i32, %arg1: i32) -> (i32, i32, i32) {
    %c0_i32 = arith.constant 0 : i32
    %c0_i32_0 = arith.constant 0 : i32
    return %arg0, %c0_i32, %arg1 : i32, i32, i32
  }
  func.func @transform_1(%arg0: i32, %arg1: i32) -> (i32, i32, i32) {
    %c0_i32 = arith.constant 0 : i32
    %c0_i32_0 = arith.constant 0 : i32
    return %arg0, %c0_i32, %arg1 : i32, i32, i32
  }
  func.func @transform_2(%arg0: i32, %arg1: i32) -> (i32, i32, i32) {
    %c0_i32 = arith.constant 0 : i32
    %c0_i32_0 = arith.constant 0 : i32
    return %arg0, %c0_i32, %arg1 : i32, i32, i32
  }
  func.func @transform_3(%arg0: i32, %arg1: i32) -> (i32, i32, i32) {
    %c0_i32 = arith.constant 0 : i32
    %c0_i32_0 = arith.constant 0 : i32
    return %arg0, %c0_i32, %arg1 : i32, i32, i32
  }
}

</mosaic_0001>

<bundles_post_ra>
// kernel: tpu_custom_call.1
= control target key start
LH: loop header
LB: loop body
LE: loop exit
PB: predicated region body
PF: predicated region fallthrough
CT: control target
= control target key end

     0   :  { %9 = vsyncpa [#allocation3], 0  ;;  %s936_s0 = inlined_call_operand.vmem [shape: f32[2,19,256], index: 0, kind: input, shape index: {}]   ;;  %s937_s1 = inlined_call_operand.vmem [shape: s32[2,1,256], index: 1, kind: input, shape index: {}]   ;;  %s938_s2 = inlined_call_operand.hbm [shape: f32[2,1,256], index: 2, kind: output, shape index: {0}]   ;;  %s939_s3 = inlined_call_operand.hbm [shape: f32[2,1,256], index: 3, kind: output, shape index: {1}]  }
   0x1   :  { %11 = vsyncpa [#allocation3 + $0x1], 0 }
   0x2   :  { %12 = vsyncpa [#allocation5], 0 }
   0x3   :  { %14 = vsyncpa [#allocation5 + $0x1], 0  ;;  %s771_s12 = smov 0   ;;  %s773_s13 = smov 0  }
   0x4   :  { %s775_s14 = smov 0   ;;  %s777_s15 = smov 0  }
   0x5   :  { %s779_s16 = smov 0   ;;  %s781_s17 = smov 0  }
   0x6 LB: > { %s543_s18 = sadd.s32 4294967295, %s749_s17   ;;  %s544_s19 = sadd.s32 4294967294, %s749_s17   ;;  %s749_s17 = sphi %s781_s17, %s20_s17   ;;  %s745_s16 = sphi %s779_s16, %s948_s16   ;;  %s741_s15 = sphi %s777_s15, %s947_s15   ;;  %s737_s14 = sphi %s775_s14, %s946_s14   ;;  %s733_s13 = sphi %s773_s13, %s945_s13   ;;  %s729_s12 = sphi %s771_s12, %s944_s12  }
   0x7   : > { %s32_s20 = sadd.s32 1, %s745_s16  ;;  %s97_s21 = sadd.s32 1, %s737_s14 }
   0x8   : > { %p34_p0 = scmp.ge.s32.totalorder %s32_s20, 2  ;;  %p107_p1 = scmp.ne.s32.totalorder %s737_s14, %s733_s13 }
   0x9   : > { %p108_p2 = scmp.eq.s32.totalorder %s543_s18, 1  ;;  %p113_p3 = scmp.ne.s32.totalorder %s733_s13, %s729_s12 }
   0xa   : > { %s950_s20 = smov (%p34_p0, %s32_s20), 0  ;;  %p114_p5 = scmp.eq.s32.totalorder %s544_s19, 1 }
   0xb   : > { %p811_p4 = por %p108_p2, %p107_p1  ;;  %s92_s23 = ssub.s32 %s745_s16, %s950_s20 }
   0xc   : > { %p547_p6 = scmp.ge.s32.totalorder %s749_s17, 1  ;;  %p95_p7 = scmp.eq.s32.totalorder %s92_s23, 0 }
   0xd   : > { %p818_p8 = por %p114_p5, %p113_p3  ;;  %p185_p9 = scmp.lt.s32.totalorder %s749_s17, 3 }
   0xe   : > { %s824_s25 = scalar_select %p95_p7, %s737_s14, %s97_s21  }
   0xf   : > { %p186_p10 = pnand %p547_p6, %p185_p9 }
  0x10   : > { %p227_p11 = scmp.lt.s32.totalorder (!%p186_p10), %s741_s15, 1  ;;  %s856_s8 = sand.u32 (!%p186_p10), 1, %s733_s13  }
  0x11   : > { %189 = sbr.rel (%p186_p10) target bundleno = 111 (0x6f), region = 28  ;;  %s548_s9 = sshll.u32 (!%p186_p10), %s856_s8, 1 }
  0x12   : > { %s554_s10 = sshll.u32 (!%p186_p10), %s741_s15, 1  ;;  %s218_s21 = scalar_lea.vmem (!%p186_p10), [#allocation2], %s548_s9 }
  0x13   : > { %s397_s19 = scalar_lea.hbm (!%p186_p10), %s938_s2, %s554_s10  ;;  %s399_s23 = sshll.u32 (!%p186_p10), %s218_s21, 4  ;;  %s400_s23 = int_to_ptr.vmem [resolvable:$true] %s399_s23 }
  0x14   : > { %s659_s5 = scalar_lea.hbm (!%p186_p10), %s938_s2, 4 }
  0x16   : > { %s228_s26 = scalar_select %p227_p11, %s741_s15, 1  ;;  %vm254_vm0 = vcmask 1042432   ;;  %v309_v16 = vlaneseq  ;;  %vm363_vm7 = vcmask 1040384  }
  0x18   : > { %s558_s27 = smul.u32 48, %s228_s26  ;;  %s551_s4 = sshll.u32 %s228_s26, 1  ;;  %v310_v21 = vshrl.u32 %v309_v16, 7  ;;  %vm871_vm9 = vcmp.lt.s32.totalorder %v309_v16, 256 }
  0x19   : > { %s243_s7 = scalar_lea.vmem %s937_s1, %s551_s4  ;;  %s401_s26 = sshll.u32 %s397_s19, 4  ;;  %s402_s26 = int_to_ptr.hbm [resolvable:$true] %s401_s26 }
  0x1a   : > { %s234_s30 = scalar_lea.vmem %s936_s0, %s558_s27  ;;  %v837_v22 = vld [vmem:[%s243_s7] sm:$0x3]  ;;  %v311_v27 = vadd.s32 8, %v310_v21  ;;  %v312_v36 = vadd.s32 16, %v310_v21  ;;  %s380_s27 = scalar_lea.sflag [#allocation3], %s856_s8 }
  0x1b   : > { %v247_v0 = vld [vmem:[%s234_s30] sm:$0xff]  ;;  %v248_v1 = vld [vmem:[%s234_s30 + $0x8] sm:$0xff]  ;;  %v249_v4 = vld [vmem:[%s234_s30 + $0x10] sm:$0xff]  ;;  %v313_v28 = vperm.slane %v837_v22, 0  ;;  %v314_v29 = vperm.slane %v837_v22, 1  ;;  %vm345_vm8 = vcmp.ne.s32.totalorder %v837_v22, 255 }
  0x1c   : > { %v251_v2 = vld [vmem:[%s234_s30 + $0x20] sm:$0x7]  ;;  %v252_v3 = vld [vmem:[%s234_s30 + $0x28] sm:$0x7]  ;;  %v250_v5 = vld [vmem:[%s234_s30 + $0x18] sm:$0xff]  ;;  %s653_s28 = sshra.s32 %s402_s26, 4  ;;  %s654_s28 = int_to_ptr.hbm [resolvable:$true] %s653_s28 }
  0x1d   : > { %v255_v6 = vsel %vm254_vm0, %v251_v2, -inf  ;;  %v264_v7 = vsel %vm254_vm0, %v252_v3, -inf  ;;  %vm315_vm1 = vcmp.eq.s32.totalorder %v310_v21, %v313_v28  ;;  %vm316_vm2 = vcmp.eq.s32.totalorder %v310_v21, %v314_v29  ;;  %s655_s29 = scalar_lea.hbm %s654_s28, 2  ;;  %p660_p1 = scmp.lt.s32.totalorder %s654_s28, %s938_s2 }
  0x1e   : > { %v256_v8 = vmax.f32 %v247_v0, %v255_v6  ;;  %v265_v9 = vmax.f32 %v248_v1, %v264_v7  ;;  %vm317_vm3 = vcmp.eq.s32.totalorder %v311_v27, %v313_v28  ;;  %vm318_vm4 = vcmp.eq.s32.totalorder %v311_v27, %v314_v29  ;;  %p656_p12 = scmp.ne.s32.totalorder %s654_s28, %s655_s29  ;;  %p661_p2 = scmp.lt.s32.totalorder %s659_s5, %s655_s29 }
  0x1f   : > { %vm319_vm5 = vcmp.eq.s32.totalorder %v312_v36, %v313_v28  ;;  %vm320_vm6 = vcmp.eq.s32.totalorder %v312_v36, %v314_v29  ;;  %v321_v43 = vsel %vm315_vm1, %v247_v0, 0.0  ;;  %v323_v44 = vsel %vm317_vm3, %v249_v4, 0.0 }
  0x20   : > { %v257_v10 = vmax.f32 %v256_v8, %v249_v4  ;;  %v266_v11 = vmax.f32 %v265_v9, %v250_v5  ;;  %v322_v45 = vsel %vm316_vm2, %v248_v1, 0.0  ;;  %v324_v46 = vsel %vm318_vm4, %v250_v5, 0.0  ;;  %p657_p13 = pnand %p656_p12, %p811_p4  ;;  %p662_p3 = por %p661_p2, %p660_p1 }
  0x21   : > { %v325_v47 = vsel %vm319_vm5, %v251_v2, 0.0  ;;  %v326_v48 = vsel %vm320_vm6, %v252_v3, 0.0  ;;  %v327_v49 = vadd.f32 %v323_v44, %v321_v43  ;;  %v336_v52 = vadd.f32 %v324_v46, %v322_v45 }
  0x22   : > { %v258_v12 = vrot.slane %v257_v10, 4  ;;  %v267_v13 = vrot.slane %v266_v11, 4  ;;  %v328_v51 = vsel %vm254_vm0, %v325_v47, 0.0  ;;  %v337_v54 = vsel %vm254_vm0, %v326_v48, 0.0  ;;  %p658_p0 = pneg %p657_p13 }
  0x23   : > { %v329_v58 = vadd.f32 %v328_v51, %v327_v49  ;;  %v338_v61 = vadd.f32 %v337_v54, %v336_v52 }
  0x24   : > { %v259_v14 = vmax.f32 %v257_v10, %v258_v12  ;;  %v268_v15 = vmax.f32 %v266_v11, %v267_v13  ;;  %p663_p5 = pnand %p662_p3, %p658_p0 }
  0x26   : > { %v260_v17 = vrot.slane %v259_v14, 2  ;;  %v269_v18 = vrot.slane %v268_v15, 2 }
  0x28   : > { %v261_v19 = vmax.f32 %v259_v14, %v260_v17  ;;  %v270_v20 = vmax.f32 %v268_v15, %v269_v18 }
  0x2a   : > { %v262_v23 = vrot.slane %v261_v19, 1  ;;  %v271_v24 = vrot.slane %v270_v20, 1 }
  0x2c   : > { %v839_v25 = vmax.f32 %v261_v19, %v262_v23  ;;  %v841_v26 = vmax.f32 %v270_v20, %v271_v24 }
  0x2e   : > { %v273_v30 = vsub.f32 %v247_v0, %v839_v25  ;;  %v274_v31 = vsub.f32 %v248_v1, %v841_v26  ;;  %v275_v32 = vsub.f32 %v249_v4, %v839_v25  ;;  %v276_v33 = vsub.f32 %v250_v5, %v841_v26 }
  0x2f   : > { %v277_v34 = vsub.f32 %v251_v2, %v839_v25  ;;  %v278_v35 = vsub.f32 %v252_v3, %v841_v26  ;;  %v330_v3 = vrot.slane %v329_v58, 4  ;;  %v339_v5 = vrot.slane %v338_v61, 4 }
  0x30   : > { %v279_v37 = vmul.f32 1.442695, %v273_v30  ;;  %v281_v38 = vmul.f32 1.442695, %v274_v31  ;;  %v283_v39 = vmul.f32 1.442695, %v275_v32 }
  0x31   : > { %v285_v40 = vmul.f32 1.442695, %v276_v33  ;;  %v287_v41 = vmul.f32 1.442695, %v277_v34  ;;  %v289_v42 = vmul.f32 1.442695, %v278_v35  ;;  %v331_v9 = vadd.f32 %v330_v3, %v329_v58 }
  0x32   : > { %619 = vpow2.f32 %v279_v37  ;;  %v340_v11 = vadd.f32 %v339_v5, %v338_v61 }
  0x33   : > { %621 = vpow2.f32 %v281_v38  ;;  %v332_v15 = vrot.slane %v331_v9, 2 }
  0x34   : > { %623 = vpow2.f32 %v283_v39  ;;  %v341_v18 = vrot.slane %v340_v11, 2 }
  0x35   : > { %625 = vpow2.f32 %v285_v40  ;;  %v333_v23 = vadd.f32 %v332_v15, %v331_v9 }
  0x36   : > { %627 = vpow2.f32 %v287_v41  ;;  %v342_v24 = vadd.f32 %v341_v18, %v340_v11 }
  0x37   : > { %629 = vpow2.f32 %v289_v42  ;;  %v334_v27 = vrot.slane %v333_v23, 1 }
  0x38   : > { %v620_v50 = vpop.eup %619  ;;  %v343_v28 = vrot.slane %v342_v24, 1 }
  0x39   : > { %v622_v53 = vpop.eup %621  ;;  %v335_v31 = vadd.f32 %v334_v27, %v333_v23 }
  0x3a   : > { %v624_v55 = vpop.eup %623  ;;  %v344_v33 = vadd.f32 %v343_v28, %v342_v24 }
  0x3b   : > { %v626_v56 = vpop.eup %625  ;;  %v291_v57 = vadd.f32 %v624_v55, %v620_v50 }
  0x3c   : > { %v628_v59 = vpop.eup %627  ;;  %v300_v60 = vadd.f32 %v626_v56, %v622_v53 }
  0x3d   : > { %v630_v62 = vpop.eup %629  ;;  %v292_v63 = vsel %vm254_vm0, %v628_v59, 0.0 }
  0x3e   : > { %v293_v0 = vadd.f32 %v292_v63, %v291_v57  ;;  %v301_v1 = vsel %vm254_vm0, %v630_v62, 0.0 }
  0x3f   : > { %v302_v2 = vadd.f32 %v301_v1, %v300_v60 }
  0x40   : > { %v294_v4 = vrot.slane %v293_v0, 4 }
  0x41   : > { %v303_v6 = vrot.slane %v302_v2, 4 }
  0x42   : > { %v295_v7 = vadd.f32 %v294_v4, %v293_v0 }
  0x43   : > { %v304_v8 = vadd.f32 %v303_v6, %v302_v2 }
  0x44   : > { %v296_v10 = vrot.slane %v295_v7, 2 }
  0x45   : > { %v305_v12 = vrot.slane %v304_v8, 2 }
  0x46   : > { %v297_v13 = vadd.f32 %v296_v10, %v295_v7 }
  0x47   : > { %v306_v14 = vadd.f32 %v305_v12, %v304_v8 }
  0x48   : > { %v298_v17 = vrot.slane %v297_v13, 1 }
  0x49   : > { %v307_v19 = vrot.slane %v306_v14, 1 }
  0x4a   : > { %v299_v20 = vadd.f32 %v298_v17, %v297_v13 }
  0x4b   : > { %v308_v21 = vadd.f32 %v307_v19, %v306_v14 }
  0x4c   : > { %631 = vlog2.f32 %v299_v20 }
  0x4d   : > { %633 = vlog2.f32 %v308_v21 }
  0x52   : > { %v632_v29 = vpop.eup %631 }
  0x53   : > { %v634_v30 = vpop.eup %633  ;;  %v347_v32 = vmul.f32 0.6931472, %v632_v29 }
  0x54   : > { %v349_v34 = vmul.f32 0.6931472, %v634_v30 }
  0x55   : > { %v350_v35 = vadd.f32 %v347_v32, %v839_v25 }
  0x56   : > { %v351_v36 = vadd.f32 %v349_v34, %v841_v26 }
  0x57   : > { %v352_v37 = vsub.f32 %v350_v35, %v335_v31 }
  0x58   : > { %v353_v38 = vsub.f32 %v351_v36, %v344_v33 }
  0x59   : > { %v354_v39 = vsub.f32 0.0, %v352_v37 }
  0x5a   : > { %v362_v40 = vrot.slane %v353_v38, 7  ;;  %v355_v25 = vsub.f32 0.0, %v353_v38 }
  0x5b   : > { %v356_v26 = vmul.f32 1.442695, %v354_v39 }
  0x5c   : > { %v364_v42 = vsel %vm363_vm7, %v352_v37, %v362_v40  ;;  %v358_v43 = vmul.f32 1.442695, %v355_v25 }
  0x5d   : > { %635 = vpow2.f32 %v356_v26  ;;  %v366_v44 = vsel %vm345_vm8, %v364_v42, 0.0 }
  0x5e   : > { %371 = vst.msk [vmem:[%s218_s21] sm:$0x3] %vm871_vm9, %v366_v44  ;;  %637 = vpow2.f32 %v358_v43 }
  0x5f   : > { %666 = shalt.err (!%p663_p5)
}
  0x60   : > { %559 = dma.vmem_to_hbm [thread:$0]  (%p811_p4), %s400_s23, 32, %s402_s26, %s380_s27  }
  0x61   : > { %s413_s19 = scalar_lea.hbm %s939_s3, %s554_s10  ;;  %s225_s21 = scalar_lea.vmem [#allocation4], %s548_s9 }
  0x62   : > { %s415_s28 = sshll.u32 %s225_s21, 4  ;;  %s417_s29 = sshll.u32 %s413_s19, 4  ;;  %s416_s28 = int_to_ptr.vmem [resolvable:$true] %s415_s28  ;;  %s418_s29 = int_to_ptr.hbm [resolvable:$true] %s417_s29 }
  0x63   : > { %v636_v16 = vpop.eup %635  ;;  %s385_s15 = scalar_lea.sflag [#allocation5], %s856_s8  ;;  %s681_s10 = sshra.s32 %s418_s29, 4  ;;  %s682_s10 = int_to_ptr.hbm [resolvable:$true] %s681_s10 }
  0x64   : > { %v638_v45 = vpop.eup %637  ;;  %s683_s23 = scalar_lea.hbm %s682_s10, 2  ;;  %s687_s27 = scalar_lea.hbm %s939_s3, 4 }
  0x65   : > { %v374_v46 = vrot.slane %v638_v45, 7  ;;  %p684_p6 = scmp.ne.s32.totalorder %s682_s10, %s683_s23  ;;  %p688_p10 = scmp.lt.s32.totalorder %s682_s10, %s939_s3 }
  0x66   : > { %p689_p11 = scmp.lt.s32.totalorder %s687_s27, %s683_s23 }
  0x67   : > { %v375_v47 = vsel %vm363_vm7, %v636_v16, %v374_v46  ;;  %p685_p7 = pnand %p684_p6, %p811_p4 }
  0x68   : > { %v377_v48 = vsel %vm345_vm8, %v375_v47, 1.0  ;;  %p690_p12 = por %p689_p11, %p688_p10 }
  0x69   : > { %378 = vst.msk [vmem:[%s225_s21] sm:$0x3] %vm871_vm9, %v377_v48  ;;  %p686_p9 = pneg %p685_p7 }
  0x6b   : > { %p691_p13 = pnand %p690_p12, %p686_p9 }
  0x6d   : > { %694 = shalt.err (!%p691_p13)
}
  0x6e   : > { %560 = dma.vmem_to_hbm [thread:$0]  (%p811_p4), %s416_s28, 32, %s418_s29, %s385_s15  }
  0x6f PF: > { %p570_p0 = scmp.ge.s32.totalorder %s749_s17, 2  ;;  %s429_s8 = sand.u32 1, %s729_s12  }
  0x70   : > { %s430_s5 = scalar_lea.sflag [#allocation3], %s429_s8 }
  0x71   : > { %p564_p1 = pnand %p570_p0, %p818_p8 }
  0x73   : > { %p565_p2 = pneg %p564_p1 }
  0x75   : > { %720 = dma.done.wait (%p565_p2), %s430_s5, 32  }
  0x76   : > { %722 = vsyncadd (%p565_p2), %s430_s5, 4294967264  ;;  %s440_s6 = scalar_lea.sflag [#allocation5], %s429_s8 }
  0x77   : > { %724 = dma.done.wait (%p565_p2), %s440_s6, 32  }
  0x78   : > { %726 = vsyncadd (%p565_p2), %s440_s6, 4294967264  ;;  %s20_s17 = sadd.s32 1, %s749_s17   ;;  %s944_s12 = smov %s733_s13 }
  0x79   : > { %p17_p3 = scmp.ge.s32.totalorder %s20_s17, 4   ;;  %s945_s13 = smov %s737_s14 }
  0x7a   : > { %s946_s14 = smov %s824_s25  ;;  %s947_s15 = smov %s745_s16 }
  0x7b   : > { %s948_s16 = smov %s950_s20  ;;  %19 = sbr.rel (!%p17_p3) target bundleno = 6 (0x6), region = 83 }
  0x80   :  { %446 = vsyncpa [#allocation3], 1 }
  0x81   :  { %448 = vsyncpa [#allocation3 + $0x1], 1 }
  0x82   :  { %449 = vsyncpa [#allocation5], 1 }
  0x83   :  { %451 = vsyncpa [#allocation5 + $0x1], 1 }

</bundles_post_ra>
